<compile_context>
chip_gen: v7x
topology: tpu7x:2x2x1
jax: 0.10.0
libtpu: 0.0.40
codegen_flags: <defaults>
</compile_context>

<pallas_src>
import functools

import jax
import jax.numpy as jnp
from jax import lax
from jax.experimental import pallas as pl
from jax.experimental.pallas import tpu as pltpu


def _round_up(x, m):
    return ((x + m - 1) // m) * m


def _log_sigmoid(x):
    # Numerically stable: logsigmoid(x) = min(x, 0) - log1p(exp(-|x|))
    return jnp.minimum(x, 0.0) - jnp.log1p(jnp.exp(-jnp.abs(x)))


def cbow_loss_kernel(
    u_idx_ref,   # VMEM block: [TB, C] int32 context indices for this tile
    w_idx_ref,   # VMEM block: [TB, 1] int32 target indices for this tile
    u_tab_ref,   # VMEM (resident): [Vp, Dp] f32 u_embeddings (zero-padded)
    w_tab_ref,   # VMEM (resident): [Vp, Dp] f32 w_embeddings (zero-padded)
    loss_ref,    # SMEM out: [1, 1] f32
    acc_ref,     # VMEM scratch: [TB, 1] f32 running per-row loss accumulator
    *, tb, c, vp, n_pos, n_rows, n,
):
    i = pl.program_id(0)

    @pl.when(i == 0)
    def _():
        acc_ref[...] = jnp.zeros_like(acc_ref)

    # One-hot / counts construction from the index tile (lane-dense compares).
    vocab_iota = lax.broadcasted_iota(jnp.int32, (tb, vp), 1)
    counts = (u_idx_ref[:, 0:1] == vocab_iota).astype(jnp.float32)
    for cc in range(1, c):  # C is small & static -> fully unrolled at trace time
        counts = counts + (u_idx_ref[:, cc:cc + 1] == vocab_iota).astype(jnp.float32)
    tgt_onehot = (w_idx_ref[...] == vocab_iota).astype(jnp.float32)

    # Gather + context-sum as MXU matmuls (f32 accumulation).
    ctx = jnp.dot(counts, u_tab_ref[...], preferred_element_type=jnp.float32)      # [TB, Dp]
    tgt = jnp.dot(tgt_onehot, w_tab_ref[...], preferred_element_type=jnp.float32)  # [TB, Dp]

    # Per-row score, sign (+ for neg rows, - for pos rows), validity mask.
    score = jnp.sum(ctx * tgt, axis=-1, keepdims=True)                 # [TB, 1]
    ridx = i * tb + lax.broadcasted_iota(jnp.int32, (tb, 1), 0)        # global row id
    sign = jnp.where(ridx < n_pos, -1.0, 1.0)
    valid = ridx < n_rows                                              # mask padded rows
    acc_ref[...] += jnp.where(valid, _log_sigmoid(sign * score), 0.0)

    @pl.when(i == pl.num_programs(0) - 1)
    def _():
        loss_ref[0, 0] = -jnp.sum(acc_ref[...]) / n


def pad_embedding_tables(u_weight, w_weight):
    """Zero-pad the embedding tables to lane/sublane-friendly shapes.

    Hoisted out of cbow_forward so it runs once per weight update, not per call.
    """
    V, D = u_weight.shape
    Dp = _round_up(D, 128)
    Vp = _round_up(V, 128)   # Vp is also the one-hot lane width -> keep it 128-aligned
    u_tab = jnp.zeros((Vp, Dp), jnp.float32).at[:V, :D].set(u_weight.astype(jnp.float32))
    w_tab = jnp.zeros((Vp, Dp), jnp.float32).at[:V, :D].set(w_weight.astype(jnp.float32))
    return u_tab, w_tab


def cbow_forward(u_tab, w_tab, pos_u, pos_w, neg_u, neg_w, n, *, tb=256):
    B, C = pos_u.shape
    Vp, Dp = u_tab.shape

    # Fuse positive and negative paths into one row set of size R = 2B.
    R = 2 * B
    u_idx = jnp.concatenate([pos_u, neg_u], axis=0).astype(jnp.int32)               # [R, C]
    w_idx = jnp.concatenate([pos_w, neg_w], axis=0).astype(jnp.int32).reshape(R, 1)  # [R, 1]

    # Batch tiling (tile size multiple of 8; pad row count to a full grid).
    tb = _round_up(min(tb, _round_up(R, 8)), 8)
    num_tiles = pl.cdiv(R, tb)
    Rp = num_tiles * tb
    u_idx_p = jnp.zeros((Rp, C), jnp.int32).at[:R].set(u_idx)
    w_idx_p = jnp.zeros((Rp, 1), jnp.int32).at[:R].set(w_idx)

    kernel = functools.partial(
        cbow_loss_kernel, tb=tb, c=C, vp=Vp, n_pos=B, n_rows=R, n=float(n))

    grid_spec = pltpu.PrefetchScalarGridSpec(
        num_scalar_prefetch=0,
        grid=(num_tiles,),
        in_specs=[
            pl.BlockSpec((tb, C), lambda i: (i, 0)),                     # context index tile
            pl.BlockSpec((tb, 1), lambda i: (i, 0)),                     # target index tile
            pl.BlockSpec(memory_space=pltpu.MemorySpace.VMEM),           # u table (resident)
            pl.BlockSpec(memory_space=pltpu.MemorySpace.VMEM),           # w table (resident)
        ],
        out_specs=pl.BlockSpec(memory_space=pltpu.MemorySpace.SMEM),     # scalar loss
        scratch_shapes=[
            pltpu.VMEM((tb, 1), jnp.float32),                            # loss accumulator
        ],
    )

    # Explicit VMEM budget: resident tables + double-buffered index tiles +
    # accumulator + headroom for the one-hot / ctx / tgt temporaries.
    vmem_bytes = (2 * Vp * Dp * 4
                  + 2 * 2 * (tb * C + tb) * 4
                  + tb * 4
                  + (8 << 20))
    vmem_limit = int(min(max(vmem_bytes, 16 << 20), 64 << 20))

    out = pl.pallas_call(
        kernel,
        out_shape=jax.ShapeDtypeStruct((1, 1), jnp.float32),
        grid_spec=grid_spec,
        # The grid axis carries the loss accumulator -> must be "arbitrary".
        compiler_params=pltpu.CompilerParams(
            dimension_semantics=("arbitrary",),
            vmem_limit_bytes=vmem_limit,
        ),
    )(u_idx_p, w_idx_p, u_tab, w_tab)
    return out[0, 0]


def cbow_forward_ref(u_weight, w_weight, pos_u, pos_w, neg_u, neg_w, n):
    pos_u_emb = jnp.take(u_weight, pos_u, axis=0).sum(axis=1)
    neg_u_emb = jnp.take(u_weight, neg_u, axis=0).sum(axis=1)
    pos_w_emb = jnp.take(w_weight, pos_w, axis=0)
    neg_w_emb = jnp.take(w_weight, neg_w, axis=0)
    score_2 = jnp.sum(pos_u_emb * pos_w_emb, axis=1)
    neg_score_2 = jnp.sum(neg_u_emb * neg_w_emb, axis=1)
    loss = jnp.sum(jax.nn.log_sigmoid(-score_2)) + jnp.sum(jax.nn.log_sigmoid(neg_score_2))
    return -1.0 * loss / n


if __name__ == "__main__":
    emb_size = 50
    emb_dimension = 32
    vocab = 2 * emb_size - 1          # hierarchical-softmax node count, as in the module
    B, C = 8, 4                       # batch of examples, context window size
    n = B

    key = jax.random.PRNGKey(0)
    k1, k2, k3, k4, k5, k6 = jax.random.split(key, 6)

    # Deterministic parameter init matching _init_embedding:
    int_range = 0.5 / emb_dimension
    u_weight = jax.random.uniform(
        k1, (vocab, emb_dimension), jnp.float32, -int_range, int_range)
    w_weight = jnp.zeros((vocab, emb_dimension), jnp.float32)   # uniform_(-0, 0) == zeros

    pos_u = jax.random.randint(k2, (B, C), 0, vocab)
    pos_w = jax.random.randint(k3, (B,), 0, vocab)
    neg_u = jax.random.randint(k4, (B, C), 0, vocab)
    neg_w = jax.random.randint(k5, (B,), 0, vocab)

    # Table padding hoisted out of the forward (runs once per weight update).
    u_tab, w_tab = pad_embedding_tables(u_weight, w_weight)

    # Case 1: module-faithful zero w_embeddings; tb=8 -> 2 grid steps
    # (pure-pos tile then pure-neg tile), exercises cross-tile accumulation.
    loss = cbow_forward(u_tab, w_tab, pos_u, pos_w, neg_u, neg_w, n, tb=8)
    jax.block_until_ready(loss)
    ref = cbow_forward_ref(u_weight, w_weight, pos_u, pos_w, neg_u, neg_w, n)
    assert jnp.allclose(loss, ref, atol=1e-5), (loss, ref)

    # Case 2: non-trivial w weights (full math path), default tile = single mixed tile.
    w_weight2 = jax.random.uniform(
        k6, (vocab, emb_dimension), jnp.float32, -int_range, int_range)
    u_tab2, w_tab2 = pad_embedding_tables(u_weight, w_weight2)
    loss2 = cbow_forward(u_tab2, w_tab2, pos_u, pos_w, neg_u, neg_w, n)
    jax.block_until_ready(loss2)
    ref2 = cbow_forward_ref(u_weight, w_weight2, pos_u, pos_w, neg_u, neg_w, n)
    assert jnp.allclose(loss2, ref2, atol=1e-5), (loss2, ref2)

    print("KERNEL_OK")
</pallas_src>

<mosaic_0001>
module attributes {stable_mosaic.version = 11 : i64} {
  func.func @cbow_loss_kernel(%arg0: i32, %arg1: memref<8x4xi32, #tpu.memory_space<vmem>>, %arg2: memref<8x1xi32, #tpu.memory_space<vmem>>, %arg3: memref<128x128xf32, #tpu.memory_space<vmem>>, %arg4: memref<128x128xf32, #tpu.memory_space<vmem>>, %arg5: memref<1x1xf32, #tpu.memory_space<smem>>, %arg6: memref<8x1xf32, #tpu.memory_space<vmem>>) attributes {dimension_semantics = [#tpu.dimension_semantics<arbitrary>], iteration_bounds = array<i64: 2>, scalar_prefetch = 0 : i64, scratch_operands = 1 : i64, tpu.core_type = #tpu.core_type<tc>, window_params = [{transform_indices = @transform_0, window_bounds = array<i64: 8, 4>}, {transform_indices = @transform_1, window_bounds = array<i64: 8, 1>}, {pipeline_mode = #tpu.pipeline_mode<synchronous>, transform_indices = @transform_2, window_bounds = array<i64: 128, 128>}, {pipeline_mode = #tpu.pipeline_mode<synchronous>, transform_indices = @transform_3, window_bounds = array<i64: 128, 128>}, {transform_indices = @transform_4, window_bounds = array<i64: 1, 1>}]} {
    %c0_i32 = arith.constant 0 : i32
    %0 = arith.cmpi eq, %arg0, %c0_i32 : i32
    %1 = arith.extui %0 : i1 to i32
    %c0_i32_0 = arith.constant 0 : i32
    %2 = arith.cmpi ne, %1, %c0_i32_0 : i32
    scf.if %2 {
      %cst_24 = arith.constant 0.000000e+00 : f32
      %67 = vector.broadcast %cst_24 : f32 to vector<8x1xf32>
      %c0_25 = arith.constant 0 : index
      %c0_26 = arith.constant 0 : index
      %68 = vector.load %arg6[%c0_25, %c0_26] : memref<8x1xf32, #tpu.memory_space<vmem>>, vector<8x1xf32>
      tpu.vector_store %arg6[%c0_25, %c0_26], %67 {strides = array<i32>} : memref<8x1xf32, #tpu.memory_space<vmem>>, vector<8x1xf32>,
    } else {
    }
    %3 = tpu.iota {dimensions = array<i32: 1>} : vector<8x128xi32>
    %c0 = arith.constant 0 : index
    %c0_1 = arith.constant 0 : index
    %4 = vector.load %arg1[%c0, %c0_1] : memref<8x4xi32, #tpu.memory_space<vmem>>, vector<8x1xi32>
    %5 = vector.broadcast %4 : vector<8x1xi32> to vector<8x128xi32>
    %6 = arith.cmpi eq, %5, %3 : vector<8x128xi32>
    %7 = arith.extui %6 : vector<8x128xi1> to vector<8x128xi32>
    %8 = arith.sitofp %7 : vector<8x128xi32> to vector<8x128xf32>
    %c0_2 = arith.constant 0 : index
    %c1 = arith.constant 1 : index
    %9 = vector.load %arg1[%c0_2, %c1] : memref<8x4xi32, #tpu.memory_space<vmem>>, vector<8x1xi32>
    %10 = vector.broadcast %9 : vector<8x1xi32> to vector<8x128xi32>
    %11 = arith.cmpi eq, %10, %3 : vector<8x128xi32>
    %12 = arith.extui %11 : vector<8x128xi1> to vector<8x128xi32>
    %13 = arith.sitofp %12 : vector<8x128xi32> to vector<8x128xf32>
    %14 = arith.addf %8, %13 : vector<8x128xf32>
    %c0_3 = arith.constant 0 : index
    %c2 = arith.constant 2 : index
    %15 = vector.load %arg1[%c0_3, %c2] : memref<8x4xi32, #tpu.memory_space<vmem>>, vector<8x1xi32>
    %16 = vector.broadcast %15 : vector<8x1xi32> to vector<8x128xi32>
    %17 = arith.cmpi eq, %16, %3 : vector<8x128xi32>
    %18 = arith.extui %17 : vector<8x128xi1> to vector<8x128xi32>
    %19 = arith.sitofp %18 : vector<8x128xi32> to vector<8x128xf32>
    %20 = arith.addf %14, %19 : vector<8x128xf32>
    %c0_4 = arith.constant 0 : index
    %c3 = arith.constant 3 : index
    %21 = vector.load %arg1[%c0_4, %c3] : memref<8x4xi32, #tpu.memory_space<vmem>>, vector<8x1xi32>
    %22 = vector.broadcast %21 : vector<8x1xi32> to vector<8x128xi32>
    %23 = arith.cmpi eq, %22, %3 : vector<8x128xi32>
    %24 = arith.extui %23 : vector<8x128xi1> to vector<8x128xi32>
    %25 = arith.sitofp %24 : vector<8x128xi32> to vector<8x128xf32>
    %26 = arith.addf %20, %25 : vector<8x128xf32>
    %c0_5 = arith.constant 0 : index
    %c0_6 = arith.constant 0 : index
    %27 = vector.load %arg2[%c0_5, %c0_6] : memref<8x1xi32, #tpu.memory_space<vmem>>, vector<8x1xi32>
    %28 = vector.broadcast %27 : vector<8x1xi32> to vector<8x128xi32>
    %29 = arith.cmpi eq, %28, %3 : vector<8x128xi32>
    %30 = arith.extui %29 : vector<8x128xi1> to vector<8x128xi32>
    %31 = arith.sitofp %30 : vector<8x128xi32> to vector<8x128xf32>
    %c0_7 = arith.constant 0 : index
    %c0_8 = arith.constant 0 : index
    %32 = vector.load %arg3[%c0_7, %c0_8] : memref<128x128xf32, #tpu.memory_space<vmem>>, vector<128x128xf32>
    %cst = arith.constant dense<0.000000e+00> : vector<8x128xf32>
    %33 = tpu.matmul %26, %32, %cst {dimension_numbers = #tpu.dot_dimension_numbers<[1], [0], [0], [1], [0, 0, 1, 1], [], []>} : vector<8x128xf32>, vector<128x128xf32>, vector<8x128xf32> -> vector<8x128xf32>
    %c0_9 = arith.constant 0 : index
    %c0_10 = arith.constant 0 : index
    %34 = vector.load %arg4[%c0_9, %c0_10] : memref<128x128xf32, #tpu.memory_space<vmem>>, vector<128x128xf32>
    %cst_11 = arith.constant dense<0.000000e+00> : vector<8x128xf32>
    %35 = tpu.matmul %31, %34, %cst_11 {dimension_numbers = #tpu.dot_dimension_numbers<[1], [0], [0], [1], [0, 0, 1, 1], [], []>} : vector<8x128xf32>, vector<128x128xf32>, vector<8x128xf32> -> vector<8x128xf32>
    %36 = arith.mulf %33, %35 : vector<8x128xf32>
    %cst_12 = arith.constant dense<0.000000e+00> : vector<8xf32>
    %37 = vector.multi_reduction <add>, %36, %cst_12 [1] : vector<8x128xf32> to vector<8xf32>
    %38 = vector.shape_cast %37 : vector<8xf32> to vector<8x1xf32>
    %c8_i32 = arith.constant 8 : i32
    %39 = arith.muli %arg0, %c8_i32 : i32
    %40 = tpu.iota {dimensions = array<i32: 0>} : vector<8x1xi32>
    %41 = vector.broadcast %39 : i32 to vector<8x1xi32>
    %42 = arith.addi %41, %40 : vector<8x1xi32>
    %c8_i32_13 = arith.constant 8 : i32
    %43 = vector.broadcast %c8_i32_13 : i32 to vector<8x1xi32>
    %44 = arith.cmpi slt, %42, %43 : vector<8x1xi32>
    %cst_14 = arith.constant -1.000000e+00 : f32
    %cst_15 = arith.constant 1.000000e+00 : f32
    %45 = vector.broadcast %cst_14 : f32 to vector<8x1xf32>
    %46 = vector.broadcast %cst_15 : f32 to vector<8x1xf32>
    %47 = arith.select %44, %45, %46 : vector<8x1xi1>, vector<8x1xf32>
    %c16_i32 = arith.constant 16 : i32
    %48 = vector.broadcast %c16_i32 : i32 to vector<8x1xi32>
    %49 = arith.cmpi slt, %42, %48 : vector<8x1xi32>
    %c0_16 = arith.constant 0 : index
    %c0_17 = arith.constant 0 : index
    %50 = vector.load %arg6[%c0_16, %c0_17] : memref<8x1xf32, #tpu.memory_space<vmem>>, vector<8x1xf32>
    %51 = arith.mulf %47, %38 : vector<8x1xf32>
    %cst_18 = arith.constant 0.000000e+00 : f32
    %52 = vector.broadcast %cst_18 : f32 to vector<8x1xf32>
    %53 = arith.minimumf %51, %52 : vector<8x1xf32>
    %54 = math.absf %51 : vector<8x1xf32>
    %cst_19 = arith.constant 0.000000e+00 : f32
    %55 = vector.broadcast %cst_19 : f32 to vector<8x1xf32>
    %56 = arith.subf %55, %54 : vector<8x1xf32>
    %57 = math.exp %56 : vector<8x1xf32>
    %58 = math.log1p %57 : vector<8x1xf32>
    %59 = arith.subf %53, %58 : vector<8x1xf32>
    %cst_20 = arith.constant 0.000000e+00 : f32
    %60 = vector.broadcast %cst_20 : f32 to vector<8x1xf32>
    %61 = arith.select %49, %59, %60 : vector<8x1xi1>, vector<8x1xf32>
    %62 = arith.addf %50, %61 : vector<8x1xf32>
    %c0_21 = arith.constant 0 : index
    %c0_22 = arith.constant 0 : index
    %63 = vector.load %arg6[%c0_21, %c0_22] : memref<8x1xf32, #tpu.memory_space<vmem>>, vector<8x1xf32>
    tpu.vector_store %arg6[%c0_21, %c0_22], %62 {strides = array<i32>} : memref<8x1xf32, #tpu.memory_space<vmem>>, vector<8x1xf32>,
    %c1_i32 = arith.constant 1 : i32
    %64 = arith.cmpi eq, %arg0, %c1_i32 : i32
    %65 = arith.extui %64 : i1 to i32
    %c0_i32_23 = arith.constant 0 : i32
    %66 = arith.cmpi ne, %65, %c0_i32_23 : i32
    scf.if %66 {
      %c0_24 = arith.constant 0 : index
      %c0_25 = arith.constant 0 : index
      %67 = vector.load %arg6[%c0_24, %c0_25] : memref<8x1xf32, #tpu.memory_space<vmem>>, vector<8x1xf32>
      %68 = vector.shape_cast %67 : vector<8x1xf32> to vector<1x8x1xf32>
      %cst_26 = arith.constant dense<0.000000e+00> : vector<1xf32>
      %69 = vector.multi_reduction <add>, %68, %cst_26 [1, 2] : vector<1x8x1xf32> to vector<1xf32>
      %70 = vector.shape_cast %69 : vector<1xf32> to vector<1x1x1xf32>
      %71 = vector.extract %70[0, 0, 0] : f32 from vector<1x1x1xf32>
      %cst_27 = arith.constant 0.000000e+00 : f32
      %72 = arith.subf %cst_27, %71 : f32
      %cst_28 = arith.constant 8.000000e+00 : f32
      %73 = arith.divf %72, %cst_28 : f32
      %c0_29 = arith.constant 0 : index
      %c0_30 = arith.constant 0 : index
      %74 = memref.load %arg5[%c0_29, %c0_30] : memref<1x1xf32, #tpu.memory_space<smem>>
      memref.store %73, %arg5[%c0_29, %c0_30] : memref<1x1xf32, #tpu.memory_space<smem>>
    } else {
    }
    return
  }
  func.func @transform_0(%arg0: i32) -> (i32, i32) {
    %c0_i32 = arith.constant 0 : i32
    %c0_i32_0 = arith.constant 0 : i32
    return %arg0, %c0_i32 : i32, i32
  }
  func.func @transform_1(%arg0: i32) -> (i32, i32) {
    %c0_i32 = arith.constant 0 : i32
    %c0_i32_0 = arith.constant 0 : i32
    return %arg0, %c0_i32 : i32, i32
  }
  func.func @transform_2(%arg0: i32) -> (i32, i32) {
    %c0_i32 = arith.constant 0 : i32
    %c0_i32_0 = arith.constant 0 : i32
    %c0_i32_1 = arith.constant 0 : i32
    return %c0_i32, %c0_i32_0 : i32, i32
  }
  func.func @transform_3(%arg0: i32) -> (i32, i32) {
    %c0_i32 = arith.constant 0 : i32
    %c0_i32_0 = arith.constant 0 : i32
    %c0_i32_1 = arith.constant 0 : i32
    return %c0_i32, %c0_i32_0 : i32, i32
  }
  func.func @transform_4(%arg0: i32) -> (i32, i32) {
    %c0_i32 = arith.constant 0 : i32
    %c0_i32_0 = arith.constant 0 : i32
    %c0_i32_1 = arith.constant 0 : i32
    return %c0_i32, %c0_i32_0 : i32, i32
  }
}

</mosaic_0001>

<bundles_post_ra>
// kernel: tpu_custom_call.1
= control target key start
LH: loop header
LB: loop body
LE: loop exit
PB: predicated region body
PF: predicated region fallthrough
CT: control target
= control target key end

     0   :  { %9 = vsyncpa [#allocation4], 0  ;;  %s1066_s0 = inlined_call_operand.vmem [shape: s32[16,4], index: 0, kind: input, shape index: {}]   ;;  %s1067_s1 = inlined_call_operand.vmem [shape: s32[16,1], index: 1, kind: input, shape index: {}]   ;;  %s1068_s2 = inlined_call_operand.hbm [shape: f32[128,128], index: 2, kind: input, shape index: {}]   ;;  %s1069_s3 = inlined_call_operand.hbm [shape: f32[128,128], index: 3, kind: input, shape index: {}]   ;;  %s1070_s4 = inlined_call_operand.hbm [shape: f32[1,1], index: 4, kind: output, shape index: {}]  }
   0x1   :  { %10 = vsyncpa [#allocation7], 0 }
   0x2   :  { %11 = vsyncpa [#allocation5], 0  ;;  %s936_s15 = smov 0  }
   0x3 LB: > { %s942_s16 = sadd.s32 4294967295, %s895_s15   ;;  %p576_p0 = scmp.ge.s32.totalorder %s895_s15, 1  ;;  %s895_s15 = sphi %s936_s15, %s17_s15  }
   0x4   : > { %p137_p1 = scmp.lt.s32.totalorder %s895_s15, 3  ;;  %s897_s17 = smov [#allocation3]  }
   0x5   : > { %s149_s18 = sshll.u32 %s897_s17, 4  ;;  %p1071_p4 = scmp.eq.s32.totalorder %s942_s16, 0  ;;  %s150_s18 = int_to_ptr.vmem [resolvable:$true] %s149_s18 }
   0x6   : > { %p947_p3 = pnand %p576_p0, %p137_p1  ;;  %s898_s20 = smov [#allocation6]  }
   0x7   : > { %s162_s21 = sshll.u32 %s898_s20, 4  ;;  %s809_s25 = scalar_lea.hbm %s1068_s2, 2048  ;;  %s960_s21 = int_to_ptr.vmem [resolvable:$true] %s162_s21 }
   0x8   : > { %s1073_s19 = scalar_select %p947_p3, 1, 0 }
   0x9   : > { %p764_p5 = pneg %p947_p3  ;;  %p810_p7 = scmp.ne.s32.totalorder %s1068_s2, %s809_s25 }
   0xa   : > { %p816_p11 = scmp.lt.u32.totalorder %s809_s25, %s1068_s2 }
   0xb   : > { %p956_p6 = pnand %p1071_p4, %p764_p5 }
   0xd   : > { %p811_p8 = pneg %p956_p6 }
   0xf   : > { %p812_p9 = pnand %p811_p8, %p810_p7 }
  0x11   : > { %p813_p10 = pneg %p812_p9 }
  0x13   : > { %p818_p12 = pnand %p816_p11, %p813_p10 }
  0x15   : > { %821 = shalt.err (!%p818_p12)
}
  0x16   : > { %s822_s30 = scalar_lea.vmem %s150_s18, 2048  ;;  %p830_p5 = scmp.lt.s32.totalorder %s150_s18, %s150_s18 }
  0x17   : > { %p823_p13 = scmp.ne.s32.totalorder %s150_s18, %s822_s30  ;;  %p831_p2 = scmp.lt.s32.totalorder %s822_s30, %s822_s30 }
  0x19   : > { %p825_p0 = pnand %p823_p13, %p811_p8  ;;  %p832_p4 = por %p831_p2, %p830_p5 }
  0x1b   : > { %p826_p1 = pneg %p825_p0 }
  0x1d   : > { %p833_p3 = pnand %p832_p4, %p826_p1 }
  0x1f   : > { %836 = shalt.err (!%p833_p3)
}
  0x20   : > { %s899_s5 = smov 128   ;;  %s900_s6 = smov 8  }
  0x21   : > { %767 = dma.hbm_to_vmem [thread:$0]  (!%p956_p6), %s1068_s2, 2048, %s150_s18, [#allocation4], %s899_s5, %s899_s5, %s900_s6  }
  0x22   : > { %s837_s11 = scalar_lea.hbm %s1069_s3, 2048 }
  0x23   : > { %p838_p7 = scmp.ne.s32.totalorder %s1069_s3, %s837_s11  ;;  %p844_p4 = scmp.lt.u32.totalorder %s837_s11, %s1069_s3 }
  0x25   : > { %p840_p2 = pnand %p838_p7, %p811_p8 }
  0x27   : > { %p841_p3 = pneg %p840_p2 }
  0x29   : > { %p846_p9 = pnand %p844_p4, %p841_p3 }
  0x2b   : > { %849 = shalt.err (!%p846_p9)
}
  0x2c   : > { %s850_s18 = scalar_lea.vmem %s960_s21, 2048  ;;  %p858_p13 = scmp.lt.s32.totalorder %s960_s21, %s960_s21 }
  0x2d   : > { %p851_p10 = scmp.ne.s32.totalorder %s960_s21, %s850_s18  ;;  %p859_p0 = scmp.lt.s32.totalorder %s850_s18, %s850_s18 }
  0x2f   : > { %p853_p11 = pnand %p851_p10, %p811_p8  ;;  %p860_p1 = por %p859_p0, %p858_p13 }
  0x31   : > { %p854_p12 = pneg %p853_p11 }
  0x33   : > { %p861_p5 = pnand %p860_p1, %p854_p12 }
  0x35   : > { %864 = shalt.err (!%p861_p5)
}
  0x36   : > { %770 = dma.hbm_to_vmem [thread:$0]  (!%p956_p6), %s1069_s3, 2048, %s960_s21, [#allocation7], %s899_s5, %s899_s5, %s900_s6  }
  0x37   : > { %p1075_p7 = scmp.ne.s32.totalorder %s1073_s19, 0 }
  0x38   : > { %p1076_p2 = scmp.eq.s32.totalorder (!%p1075_p7), %s942_s16, 0 }
  0x39   : > { %192 = sbr.rel (%p1075_p7) target bundleno = 850 (0x352), region = 36 }
  0x40   : > { %882 = dma.done.wait (%p1076_p2), [#allocation4], 2048   ;;  %p1077_p8 = pmov %p1076_p2 }
  0x41   : > { %p1078_p3 = pmov %p1076_p2 }
  0x42   : > { %884 = vsyncadd (%p1077_p8), [#allocation4], 4294965248 }
  0x43   : > { %886 = dma.done.wait (%p1078_p3), [#allocation7], 2048   ;;  %p1079_p4 = pmov %p1076_p2 }
  0x44   : > { %p220_p9 = scmp.lt.s32.totalorder %s942_s16, 1  ;;  %p1080_p6 = scmp.ne.s32.totalorder %s942_s16, 0 }
  0x45   : > { %888 = vsyncadd (%p1079_p4), [#allocation7], 4294965248  ;;  %vm232_vm0 = vcmask (!%p1080_p6), 7168   ;;  %v901_v0 = vmov (!%p1080_p6), 0.0  }
  0x46   : > { %s221_s22 = scalar_select %p220_p9, %s942_s16, 1 }
  0x47   : > { %231 = sbr.rel (%p1080_p6) target bundleno = 78 (0x4e), region = 48  ;;  %233 = vst.msk [vmem:[#allocation2] sm:$0xff] (!%p1080_p6), %vm232_vm0, %v901_v0 }
  0x48   : > { %s583_s21 = sshll.u32 %s221_s22, 3 }
  0x49   : > { %s223_s25 = scalar_lea.vmem %s1066_s0, %s583_s21  ;;  %s1027_s28 = scalar_lea.vmem %s1067_s1, %s583_s21 }
  0x4e PF: > { %v236_v1 = vld [vmem:[%s223_s25] sm:$0xff]  ;;  %v902_v2 = vmov 0   ;;  %v903_v3 = vmov 2   ;;  %v357_v4 = vld [vmem:[#allocation6] sm:$0xff]  ;;  %v359_v9 = vld [vmem:[#allocation6 + $0x10] sm:$0xff]  ;;  %v904_v11 = vmov 0.0|0.0   ;;  %v234_v57 = vlaneseq }
  0x4f   : > { %799 = vset.pattern.permute.xlu0 %v902_v2  ;;  %801 = vset.pattern.permute.xlu1 %v903_v3  ;;  %v358_v5 = vld [vmem:[#allocation6 + $0x8] sm:$0xff]  ;;  %v271_v6 = vld [vmem:[#allocation3] sm:$0xff]  ;;  %v360_v10 = vld [vmem:[#allocation6 + $0x18] sm:$0xff]  ;;  %v905_v19 = vmov 1   ;;  %v906_v20 = vmov 3   ;;  %vm907_vm1 = vmmov 0  }
  0x50   : > { %238 = vperm.xlu0 %799, %v236_v1   ;;  %251 = vperm.xlu1 %801, %v236_v1   ;;  %v727_v7 = vpack.c.bf16 %v358_v5, %v357_v4  ;;  %v272_v8 = vld [vmem:[#allocation3 + $0x8] sm:$0xff]  ;;  %v273_v13 = vld [vmem:[#allocation3 + $0x10] sm:$0xff]  ;;  %v274_v14 = vld [vmem:[#allocation3 + $0x18] sm:$0xff]  ;;  %v730_v15 = vpack.c.bf16 %v360_v10, %v359_v9  ;;  %v908_v36 = vmov 0.0   ;;  %v235_v59 = vand.u32 127, %v234_v57  ;;  %s592_s29 = sshll.u32 %s942_s16, 3 }
  0x51   : > { %726 = vmatprep.subr.bf16.mxu1 %v904_v11  ;;  %702 = vmatprep.subr.bf16.mxu0 %v904_v11  ;;  %v703_v12 = vpack.c.bf16 %v272_v8, %v271_v6  ;;  %v706_v16 = vpack.c.bf16 %v274_v14, %v273_v13  ;;  %v361_v17 = vld [vmem:[#allocation6 + $0x20] sm:$0xff]  ;;  %v362_v18 = vld [vmem:[#allocation6 + $0x28] sm:$0xff]  ;;  %v363_v26 = vld [vmem:[#allocation6 + $0x30] sm:$0xff]  ;;  %v448_v13 = vshrl.u32 %v234_v57, 7  ;;  %v449_v14 = vstv %s592_s29  ;;  %p593_p10 = scmp.ne.s32.totalorder %s942_s16, 1 }
  0x52   : > { %728 = vmatpush3.bf16.msra.mxu1 %v727_v7  ;;  %v275_v21 = vld [vmem:[#allocation3 + $0x20] sm:$0xff]  ;;  %v276_v22 = vld [vmem:[#allocation3 + $0x28] sm:$0xff]  ;;  %v733_v23 = vpack.c.bf16 %v362_v18, %v361_v17  ;;  %v364_v27 = vld [vmem:[#allocation6 + $0x38] sm:$0xff]  ;;  %699 = vmatprep.mubr.msk.f32.mxu1 %vm907_vm1, %v908_v36  ;;  %v909_v7 = vmov 1.0   ;;  %vm473_vm10 = vcmask 7168  }
  0x53   : > { %704 = vmatpush3.bf16.msra.mxu0 %v703_v12  ;;  %729 = vmatprep.subr.bf16.mxu1 %v904_v11  ;;  %v264_v24 = vld [vmem:[%s1027_s28] sm:$0xff]  ;;  %v709_v25 = vpack.c.bf16 %v276_v22, %v275_v21  ;;  %v277_v28 = vld [vmem:[#allocation3 + $0x30] sm:$0xff]  ;;  %v278_v29 = vld [vmem:[#allocation3 + $0x38] sm:$0xff]  ;;  %v736_v30 = vpack.c.bf16 %v364_v27, %v363_v26 }
  0x54   : > { %800 = vset.pattern.permute.xlu0 %v905_v19  ;;  %802 = vset.pattern.permute.xlu1 %v906_v20  ;;  %v712_v31 = vpack.c.bf16 %v278_v29, %v277_v28  ;;  %v365_v32 = vld [vmem:[#allocation6 + $0x40] sm:$0xff]  ;;  %v366_v33 = vld [vmem:[#allocation6 + $0x48] sm:$0xff]  ;;  %v367_v39 = vld [vmem:[#allocation6 + $0x50] sm:$0xff] }
  0x55   : > { %244 = vperm.xlu0 %800, %v236_v1   ;;  %258 = vperm.xlu1 %802, %v236_v1   ;;  %v279_v34 = vld [vmem:[#allocation3 + $0x40] sm:$0xff]  ;;  %v280_v35 = vld [vmem:[#allocation3 + $0x48] sm:$0xff]  ;;  %v739_v37 = vpack.c.bf16 %v366_v33, %v365_v32  ;;  %v368_v40 = vld [vmem:[#allocation6 + $0x58] sm:$0xff] }
  0x56   : > { %705 = vmatprep.subr.bf16.mxu0 %v904_v11  ;;  %731 = vmatpush3.bf16.msra.mxu1 %v730_v15  ;;  %v715_v38 = vpack.c.bf16 %v280_v35, %v279_v34  ;;  %v281_v41 = vld [vmem:[#allocation3 + $0x50] sm:$0xff]  ;;  %v282_v42 = vld [vmem:[#allocation3 + $0x58] sm:$0xff]  ;;  %v742_v43 = vpack.c.bf16 %v368_v40, %v367_v39  ;;  %v369_v45 = vld [vmem:[#allocation6 + $0x60] sm:$0xff]  ;;  %v450_v15 = vadd.s32 %v449_v14, %v448_v13 }
  0x57   : > { %707 = vmatpush3.bf16.msra.mxu0 %v706_v16  ;;  %732 = vmatprep.subr.bf16.mxu1 %v904_v11  ;;  %v718_v44 = vpack.c.bf16 %v282_v42, %v281_v41  ;;  %v370_v46 = vld [vmem:[#allocation6 + $0x68] sm:$0xff]  ;;  %v283_v47 = vld [vmem:[#allocation3 + $0x60] sm:$0xff]  ;;  %v371_v51 = vld [vmem:[#allocation6 + $0x70] sm:$0xff] }
  0x58   : > { %708 = vmatprep.subr.bf16.mxu0 %v904_v11  ;;  %664 = vmatprep.mubr.msk.f32.mxu0 %vm907_vm1, %v908_v36  ;;  %v284_v48 = vld [vmem:[#allocation3 + $0x68] sm:$0xff]  ;;  %v745_v49 = vpack.c.bf16 %v370_v46, %v369_v45  ;;  %v372_v52 = vld [vmem:[#allocation6 + $0x78] sm:$0xff]  ;;  %v285_v53 = vld [vmem:[#allocation3 + $0x70] sm:$0xff]  ;;  %vm451_vm7 = vcmp.lt.s32.totalorder %v450_v15, 8  ;;  %vm453_vm9 = vcmp.lt.s32.totalorder %v450_v15, 16 }
  0x59   : > { %803 = vset.pattern.permute.xlu1 %v902_v2  ;;  %804 = vset.pattern.permute.xlu0 %v902_v2  ;;  %v721_v50 = vpack.c.bf16 %v284_v48, %v283_v47  ;;  %v286_v54 = vld [vmem:[#allocation3 + $0x78] sm:$0xff]  ;;  %v748_v55 = vpack.c.bf16 %v372_v52, %v371_v51  ;;  %v452_v16 = vsel %vm451_vm7, -1.0, %v909_v7 }
  0x5a   : > { %266 = vperm.xlu1 %803, %v264_v24   ;;  %734 = vmatpush3.bf16.msra.mxu1 %v733_v23  ;;  %v724_v56 = vpack.c.bf16 %v286_v54, %v285_v53  ;;  %v454_v32 = vld [vmem:[#allocation2] sm:$0xff] }
  0x5b   : > { %710 = vmatpush3.bf16.msra.mxu0 %v709_v25  ;;  %735 = vmatprep.subr.bf16.mxu1 %v904_v11 }
  0x5c   : > { %711 = vmatprep.subr.bf16.mxu0 %v904_v11 }
  0x5e   : > { %737 = vmatpush3.bf16.msra.mxu1 %v736_v30 }
  0x5f   : > { %713 = vmatpush3.bf16.msra.mxu0 %v712_v31  ;;  %738 = vmatprep.subr.bf16.mxu1 %v904_v11 }
  0x60   : > { %714 = vmatprep.subr.bf16.mxu0 %v904_v11 }
  0x62   : > { %740 = vmatpush3.bf16.msra.mxu1 %v739_v37 }
  0x63   : > { %716 = vmatpush3.bf16.msra.mxu0 %v715_v38  ;;  %741 = vmatprep.subr.bf16.mxu1 %v904_v11 }
  0x64   : > { %717 = vmatprep.subr.bf16.mxu0 %v904_v11 }
  0x66   : > { %743 = vmatpush3.bf16.msra.mxu1 %v742_v43 }
  0x67   : > { %719 = vmatpush3.bf16.msra.mxu0 %v718_v44  ;;  %744 = vmatprep.subr.bf16.mxu1 %v904_v11 }
  0x68   : > { %720 = vmatprep.subr.bf16.mxu0 %v904_v11 }
  0x6a   : > { %746 = vmatpush3.bf16.msra.mxu1 %v745_v49 }
  0x6b   : > { %722 = vmatpush3.bf16.msra.mxu0 %v721_v50  ;;  %747 = vmatprep.subr.bf16.mxu1 %v904_v11 }
  0x6c   : > { %723 = vmatprep.subr.bf16.mxu0 %v904_v11 }
  0x6e   : > { %749 = vmatpush3.bf16.msra.mxu1 %v748_v55 }
  0x6f   : > { %725 = vmatpush3.bf16.msra.mxu0 %v724_v56 }
  0xcf   : > { %v239_v58 = vpop.permute.xlu0 %238  ;;  %v252_v60 = vpop.permute.xlu1 %251 }
  0xd0   : > { %vm240_vm2 = vcmp.eq.s32.totalorder %v239_v58, %v235_v59  ;;  %vm253_vm3 = vcmp.eq.s32.totalorder %v252_v60, %v235_v59 }
  0xd1   : > { %v586_v63 = vsel %vm240_vm2, 1.0, %v908_v36  ;;  %v588_v2 = vsel %vm253_vm3, 1.0, %v908_v36 }
  0xd4   : > { %v245_v61 = vpop.permute.xlu0 %244  ;;  %v259_v62 = vpop.permute.xlu1 %258 }
  0xd5   : > { %vm246_vm4 = vcmp.eq.s32.totalorder %v245_v61, %v235_v59  ;;  %vm260_vm5 = vcmp.eq.s32.totalorder %v259_v62, %v235_v59 }
  0xd6   : > { %v587_v0 = vsel %vm246_vm4, 1.0, %v908_v36  ;;  %v589_v5 = vsel %vm260_vm5, 1.0, %v908_v36 }
  0xd7   : > { %v249_v1 = vadd.f32 %v587_v0, %v586_v63 }
  0xd9   : > { %v256_v3 = vadd.f32 %v588_v2, %v249_v1  ;;  %v267_v4 = vpop.permute.xlu1 %266 }
  0xda   : > { %vm268_vm6 = vcmp.eq.s32.totalorder %v267_v4, %v235_v59 }
  0xdb   : > { %v263_v6 = vadd.f32 %v589_v5, %v256_v3  ;;  %700 = vmatmul.mubr.msk.f32.vlgmr.msra.gmra.mrb[0].mxu1 %vm268_vm6, %v909_v7 }
  0xdd   : > { %665 = vmatmul.mubr.f32.vlgmr.msra.gmra.mrb[0].mxu0 %v263_v6 }
 0x1ae   : > { %v439_v8 = vpop.f32.mrb[0].mxu1 }
 0x1af   : > { %v701_v9 = vpop.f32.mrb[1].mxu1 }
 0x1b0   : > { %v353_v10 = vpop.f32.mrb[0].mxu0 }
 0x1b1   : > { %v443_v11 = vmul.f32 %v439_v8, %v353_v10  ;;  %v666_v12 = vpop.f32.mrb[1].mxu0 }
 0x1b3   : > { %444 = vadd.xlane.f32.xlu0 %v443_v11 }
 0x240   : > { %v445_v17 = vpop.xlane.xlu0 %444 }
 0x241   : > { %v455_v18 = vmul.f32 %v452_v16, %v445_v17 }
 0x243   : > { %v457_v19 = vand.u32 2147483647, %v455_v18  ;;  %v456_v30 = vmin.f32 %v455_v18, 0.0 }
 0x245   : > { %v458_v20 = vsub.f32 0.0, %v457_v19 }
 0x247   : > { %v459_v21 = vmul.f32 1.442695, %v458_v20 }
 0x249   : > { %805 = vpow2.f32 %v459_v21 }
 0x253   : > { %v806_v22 = vpop.eup %805 }
 0x254   : > { %v461_v23 = vadd.f32 1.0, %v806_v22  ;;  %v464_v24 = vmul.f32 -0.5, %v806_v22  ;;  %v467_v26 = vand.u32 2147483647, %v806_v22 }
 0x256   : > { %807 = vlog2.f32 %v461_v23  ;;  %v465_v25 = vadd.f32 1.0, %v464_v24  ;;  %vm468_vm8 = vcmp.lt.f32.partialorder %v467_v26, 0.0004427343 }
 0x258   : > { %v466_v29 = vmul.f32 %v806_v22, %v465_v25 }
 0x260   : > { %v808_v27 = vpop.eup %807 }
 0x261   : > { %v463_v28 = vmul.f32 0.6931472, %v808_v27 }
 0x263   : > { %v469_v31 = vsel %vm468_vm8, %v466_v29, %v463_v28  ;;  %478 = sbr.rel (%p593_p10) target bundleno = 835 (0x343), region = 52 }
 0x264   : > { %v470_v33 = vsub.f32 %v456_v30, %v469_v31 }
 0x266   : > { %v471_v34 = vsel %vm453_vm9, %v470_v33, 0.0 }
 0x267   : > { %v472_v35 = vadd.f32 %v471_v34, %v454_v32 }
 0x269   : > { %474 = vst.msk [vmem:[#allocation2] sm:$0xff] %vm473_vm10, %v472_v35 }
 0x270   : > { %v479_v36 = vld [vmem:[#allocation2] sm:$0xff] }
 0x271   : > { %v480_v37 = vsel %vm473_vm10, %v479_v36, 0.0 }
 0x272   : > { %481 = vadd.xlane.f32.xlu0 %v480_v37 }
 0x2ff   : > { %v482_v38 = vpop.xlane.xlu0 %481 }
 0x300   : > { %v483_v39 = vrot.slane %v482_v38, 4 }
 0x302   : > { %v484_v40 = vadd.f32 %v483_v39, %v482_v38 }
 0x304   : > { %v485_v41 = vrot.slane %v484_v40, 2 }
 0x306   : > { %v486_v42 = vadd.f32 %v485_v41, %v484_v40 }
 0x308   : > { %v487_v43 = vrot.slane %v486_v42, 1 }
 0x30a   : > { %v488_v44 = vadd.f32 %v487_v43, %v486_v42 }
 0x30c   : > { %750 = vpush %v488_v44 }
 0x33d   : > { %s751_s30 = spop %750 }
 0x33e   : > { %s490_s5 = ssub.f32 0.0, %s751_s30 }
 0x340   : > { %s493_s6 = smul.f32 0.125, %s490_s5 }
 0x342   : > { %495 = sst [smem:[#allocation8]] %s493_s6 }
 0x343 PF: > { %p775_p11 = scmp.eq.s32.totalorder %s942_s16, 1  ;;  %s865_s9 = scalar_lea.hbm %s1070_s4, 16 }
 0x344   : > { %p866_p12 = scmp.ne.s32.totalorder %s1070_s4, %s865_s9  ;;  %p871_p1 = scmp.lt.u32.totalorder %s865_s9, %s1070_s4 }
 0x346   : > { %p867_p13 = pnand %p866_p12, %p775_p11 }
 0x348   : > { %p868_p0 = pneg %p867_p13 }
 0x34a   : > { %p873_p5 = pnand %p871_p1, %p868_p0 }
 0x34c   : > { %876 = shalt.err (!%p873_p5)
}
 0x34d   : > { %s910_s14 = smov [#allocation8]  }
 0x34e   : > { %761 = dma.smem_to_hbm (%p775_p11), %s910_s14, 16, %s1070_s4, [#allocation5]  }
 0x34f   : > { %890 = dma.done.wait (%p775_p11), [#allocation5], 16  }
 0x350   : > { %892 = vsyncadd (%p775_p11), [#allocation5], 4294967280 }
 0x351   : > { %509 = sfence }
 0x352 PF: > { %s17_s15 = sadd.s32 1, %s895_s15  }
 0x353   : > { %p14_p7 = scmp.ge.s32.totalorder %s17_s15, 4  }
 0x355   :  { %16 = sbr.rel (!%p14_p7) target bundleno = 3 (0x3), region = 84 }
 0x35c   :  { %515 = vsyncpa [#allocation4], 1 }
 0x35d   :  { %517 = vsyncpa [#allocation4 + $0x1], 1 }
 0x35e   :  { %518 = vsyncpa [#allocation7], 1 }
 0x35f   :  { %519 = vsyncpa [#allocation5], 1 }
 0x360   :  { %521 = vsyncpa [#allocation5 + $0x1], 1 }

</bundles_post_ra>
